<compile_context>
chip_gen: v6e
topology: v6e:2x2x1
jax: 0.10.0
libtpu: 0.0.40
codegen_flags: <defaults>
</compile_context>

<pallas_src>
import jax
import jax.numpy as jnp
from jax import lax
from jax.experimental import pallas as pl
from jax.experimental.pallas import tpu as pltpu

LANES = 128
SUBLANES = 8


def _round_up(x, m):
    return ((x + m - 1) // m) * m


def _cdiv(a, b):
    return (a + b - 1) // b


# ----------------------------------------------------------------------------
# Pure-jnp epilogue (also the recommended path for a single triple).
# ----------------------------------------------------------------------------
def min_norm_linear_solver_inline(v1v1, v1v2, v2v2):
    """Min-norm epilogue with no kernel boundary. Returns (gamma, cost)."""
    a = jnp.asarray(v1v1, jnp.float32)
    b = jnp.asarray(v1v2, jnp.float32)
    c = jnp.asarray(v2v2, jnp.float32)
    gamma_in = (c - b) / (a + c - 2.0 * b + 1e-8)
    cost_in = c + gamma_in * (b - c)
    cond1 = b >= a
    cond2 = b >= c
    gamma = jnp.where(cond1, 1.0, jnp.where(cond2, 0.0, gamma_in))
    cost = jnp.where(cond1, a, jnp.where(cond2, c, cost_in))
    return gamma, cost


# ----------------------------------------------------------------------------
# Batched elementwise solver: many triples per vreg on the VPU.
# ----------------------------------------------------------------------------
def _minnorm_batched_kernel(a_ref, b_ref, c_ref, gamma_ref, cost_ref):
    a = a_ref[...]   # <v1, v1>, shape (tr, 128)
    b = b_ref[...]   # <v1, v2>
    c = c_ref[...]   # <v2, v2>

    # Interior (line-segment) solution.  EUP reciprocal + two Newton steps:
    # matches true division to ~1 ulp while leaving the VALU slot free.
    denom = a + c - 2.0 * b + 1e-8
    r = pl.reciprocal(denom, approx=True)
    r = r * (2.0 - denom * r)
    r = r * (2.0 - denom * r)
    gamma_in = (c - b) * r
    cost_in = c + gamma_in * (b - c)

    cond1 = b >= a   # -> gamma = 1.0, cost = v1v1
    cond2 = b >= c   # -> gamma = 0.0, cost = v2v2   (only if cond1 is False)

    gamma_ref[...] = jnp.where(cond1, 1.0, jnp.where(cond2, 0.0, gamma_in))
    cost_ref[...] = jnp.where(cond1, a, jnp.where(cond2, c, cost_in))


def min_norm_linear_solver_batched(v1v1, v1v2, v2v2, *, block_rows=2048):
    """Solve N independent min-norm problems elementwise.

    Inputs may be scalars or arrays of identical shape; returns (gamma, cost)
    with that same shape.  Data is laid out lane-dense as (rows, 128) f32 so
    every output store is an unmasked vst; the ragged last grid block (if any)
    relies on Pallas partial-block semantics (garbage rows computed, writes
    past the array discarded), so no rows-round-up over-streaming happens.
    """
    a = jnp.asarray(v1v1, jnp.float32)
    orig_shape = a.shape
    a = a.reshape(-1)
    b = jnp.asarray(v1v2, jnp.float32).reshape(-1)
    c = jnp.asarray(v2v2, jnp.float32).reshape(-1)
    n = a.shape[0]

    rows = max(_cdiv(n, LANES), 1)
    total = rows * LANES
    tr = min(_round_up(block_rows, SUBLANES), _round_up(rows, SUBLANES))
    grid = _cdiv(rows, tr)

    def prep(x):
        if total != n:
            # <=127-element tail pad; padded lanes hit the b >= a branch and
            # never produce NaN/Inf, and are sliced away below.
            x = jnp.pad(x, (0, total - n))
        return x.reshape(rows, LANES)

    spec = pl.BlockSpec((tr, LANES), lambda i: (i, 0))
    gamma, cost = pl.pallas_call(
        _minnorm_batched_kernel,
        out_shape=(
            jax.ShapeDtypeStruct((rows, LANES), jnp.float32),
            jax.ShapeDtypeStruct((rows, LANES), jnp.float32),
        ),
        grid=(grid,),
        in_specs=[spec, spec, spec],
        out_specs=(spec, spec),
        compiler_params=pltpu.CompilerParams(
            dimension_semantics=("parallel",),
            vmem_limit_bytes=32 * 1024 * 1024,
        ),
    )(prep(a), prep(b), prep(c))

    gamma = gamma.reshape(-1)[:n].reshape(orig_shape)
    cost = cost.reshape(-1)[:n].reshape(orig_shape)
    return gamma, cost


def min_norm_linear_solver(v1v1, v1v2, v2v2):
    """Module-faithful API: scalar products in, (gamma, cost) out (on device).

    Routed through the batched Pallas kernel (a single lane-dense tile).  A
    lone triple is launch-overhead bound by construction; prefer
    min_norm_linear_solver_inline / _fused in real use.
    """
    return min_norm_linear_solver_batched(v1v1, v1v2, v2v2)


# ----------------------------------------------------------------------------
# Fused solver: dot products over the raw gradient vectors, one streaming pass.
# ----------------------------------------------------------------------------
def _make_fused_kernel(tr, rows, kb_per_core, ragged):
    g = tr // SUBLANES

    def kernel(v1_ref, v2_ref, p11_ref, p12_ref, p22_ref):
        k = pl.program_id(1)

        @pl.when(k == 0)
        def _():
            p11_ref[...] = jnp.zeros_like(p11_ref)
            p12_ref[...] = jnp.zeros_like(p12_ref)
            p22_ref[...] = jnp.zeros_like(p22_ref)

        # Stream blocks in their native dtype; math in f32.
        a = v1_ref[...].astype(jnp.float32)   # (tr, 128)
        b = v2_ref[...].astype(jnp.float32)

        if ragged:
            # Mask rows past the true row count (last partial block and any
            # clamped duplicate block on the second core contribute zero).
            c = pl.program_id(0)
            base = (c * kb_per_core + k) * tr
            row = base + lax.broadcasted_iota(jnp.int32, (tr, 1), 0)
            valid = row < rows
            a = jnp.where(valid, a, 0.0)
            b = jnp.where(valid, b, 0.0)

        # Vreg-shaped (8,128) accumulators: cross-vreg adds only (VALU), the
        # cross-sublane/lane reduce happens once in the wrapper.
        # TODO(synk): plain f32 accumulation; for 1e7+-element gradients a
        # compensated sum would be more accurate.
        p11_ref[...] += jnp.sum((a * a).reshape(g, SUBLANES, LANES), axis=0)
        p12_ref[...] += jnp.sum((a * b).reshape(g, SUBLANES, LANES), axis=0)
        p22_ref[...] += jnp.sum((b * b).reshape(g, SUBLANES, LANES), axis=0)

    return kernel


def min_norm_linear_solver_fused(v1, v2, *, block_rows=8192, num_cores=2):
    """Fused <v1,v1>, <v1,v2>, <v2,v2> streaming pass + min-norm epilogue.

    v1, v2 are the raw (gradient) vectors in their native dtype (bf16 stays
    bf16 in HBM).  Returns (gamma, cost) as 0-d f32 arrays.  The reduction is
    split over a leading size-`num_cores` parallel grid axis (both v7x
    TensorCores; harmless serialization on v5e/v6e); per-core (8,128) partial
    sums are combined and the scalar epilogue applied in the wrapper.
    """
    v1 = jnp.asarray(v1).reshape(-1)
    v2 = jnp.asarray(v2).reshape(-1)
    if v1.dtype != v2.dtype:
        dt = jnp.promote_types(v1.dtype, v2.dtype)
        v1 = v1.astype(dt)
        v2 = v2.astype(dt)
    n = v1.shape[0]

    rows = max(_cdiv(n, LANES), 1)
    total = rows * LANES

    def prep(x):
        if total != n:
            # Only hit when len(v) is not a multiple of 128 (<=127-elem tail);
            # otherwise the contiguous 1-D -> 2-D reshape below is free.
            x = jnp.pad(x, (0, total - n))
        return x.reshape(rows, LANES)

    v1p = prep(v1)
    v2p = prep(v2)

    tr = min(_round_up(block_rows, SUBLANES), _round_up(rows, SUBLANES))
    grid_k_total = _cdiv(rows, tr)
    ncores = max(1, min(num_cores, grid_k_total))
    kb_per_core = _cdiv(grid_k_total, ncores)
    ragged = (ncores * kb_per_core * tr) != rows
    last_block = grid_k_total - 1

    if ncores * kb_per_core == grid_k_total:
        def in_index(c, k):
            return (c * kb_per_core + k, 0)
    else:
        def in_index(c, k):
            # Clamp so a core's trailing (logically out-of-range) block simply
            # re-reads the last real block; the kernel masks it to zero.
            return (jnp.minimum(c * kb_per_core + k, last_block), 0)

    in_spec = pl.BlockSpec((tr, LANES), in_index)
    out_spec = pl.BlockSpec((SUBLANES, LANES), lambda c, k: (c, 0))
    out_sds = jax.ShapeDtypeStruct((ncores * SUBLANES, LANES), jnp.float32)

    kernel = _make_fused_kernel(tr, rows, kb_per_core, ragged)

    p11, p12, p22 = pl.pallas_call(
        kernel,
        out_shape=(out_sds, out_sds, out_sds),
        grid=(ncores, kb_per_core),
        in_specs=[in_spec, in_spec],
        out_specs=(out_spec, out_spec, out_spec),
        compiler_params=pltpu.CompilerParams(
            dimension_semantics=("parallel", "arbitrary"),
            vmem_limit_bytes=32 * 1024 * 1024,
        ),
    )(v1p, v2p)

    s11 = jnp.sum(p11)
    s12 = jnp.sum(p12)
    s22 = jnp.sum(p22)
    return min_norm_linear_solver_inline(s11, s12, s22)


# ----------------------------------------------------------------------------
# Pure-Python reference matching the PyTorch module exactly.
# ----------------------------------------------------------------------------
def _reference(v1v1, v1v2, v2v2):
    if v1v2 >= v1v1:
        return (1.0, v1v1)
    if v1v2 >= v2v2:
        return (0.0, v2v2)
    gamma = (v2v2 - v1v2) / (v1v1 + v2v2 - 2 * v1v2 + 1e-08)
    cost = v2v2 + gamma * (v1v2 - v2v2)
    return (gamma, cost)


def _close(x, ref, rtol=1e-4):
    return abs(float(x) - float(ref)) <= rtol * max(1.0, abs(float(ref)))


if __name__ == "__main__":
    key = jax.random.PRNGKey(0)
    keys = jax.random.split(key, 8)
    ok = True

    # --- 1. module-faithful scalar API --------------------------------------
    v1 = jax.random.normal(keys[0], (32,), dtype=jnp.float32)
    v2 = jax.random.normal(keys[1], (32,), dtype=jnp.float32)
    cases = [
        (float(jnp.dot(v1, v1)), float(jnp.dot(v1, v2)), float(jnp.dot(v2, v2))),
        (1.0, 2.0, 3.0),   # v1v2 >= v1v1
        (5.0, 2.0, 1.5),   # v1v2 >= v2v2
        (5.0, 1.0, 4.0),   # interior solution
    ]
    for a, b, c in cases:
        gamma, cost = min_norm_linear_solver(a, b, c)
        gamma = jax.block_until_ready(gamma)
        cost = jax.block_until_ready(cost)
        g_ref, c_ref = _reference(a, b, c)
        if not (_close(gamma, g_ref) and _close(cost, c_ref)):
            ok = False

    # --- 2. batched solver: 16 independent triples ---------------------------
    V1 = jax.random.normal(keys[2], (16, 8), dtype=jnp.float32)
    V2 = jax.random.normal(keys[3], (16, 8), dtype=jnp.float32)
    av = jnp.sum(V1 * V1, axis=1)
    bv = jnp.sum(V1 * V2, axis=1)
    cv = jnp.sum(V2 * V2, axis=1)
    gamma_b, cost_b = min_norm_linear_solver_batched(av, bv, cv)
    gamma_b = jax.block_until_ready(gamma_b)
    cost_b = jax.block_until_ready(cost_b)
    for i in range(16):
        g_ref, c_ref = _reference(float(av[i]), float(bv[i]), float(cv[i]))
        if not (_close(gamma_b[i], g_ref) and _close(cost_b[i], c_ref)):
            ok = False

    # --- 3. fused solver over raw gradient vectors ----------------------------
    def check_fused(g1, g2, **kw):
        gamma_f, cost_f = min_norm_linear_solver_fused(g1, g2, **kw)
        gamma_f = jax.block_until_ready(gamma_f)
        cost_f = jax.block_until_ready(cost_f)
        a32 = jnp.asarray(g1, jnp.float32)
        b32 = jnp.asarray(g2, jnp.float32)
        g_ref, c_ref = _reference(float(jnp.dot(a32, a32)),
                                  float(jnp.dot(a32, b32)),
                                  float(jnp.dot(b32, b32)))
        return _close(gamma_f, g_ref) and _close(cost_f, c_ref)

    # (a) even split across 2 cores, multi-step reduction, no masking.
    g1 = jax.random.normal(keys[4], (4096,), dtype=jnp.float32)
    g2 = 0.5 * g1 + jax.random.normal(keys[5], (4096,), dtype=jnp.float32)
    ok &= check_fused(g1, g2, block_rows=8)

    # (b) ragged split: second core gets a duplicate (clamped, fully masked)
    #     block plus a partial block.
    g1 = jax.random.normal(keys[6], (6144,), dtype=jnp.float32)
    g2 = 0.25 * g1 + jax.random.normal(keys[7], (6144,), dtype=jnp.float32)
    ok &= check_fused(g1, g2, block_rows=16)

    # (c) bf16 gradients with a non-multiple-of-128 length (pad + upcast path).
    g1_bf = jax.random.normal(keys[4], (1000,), dtype=jnp.float32).astype(jnp.bfloat16)
    g2_bf = jax.random.normal(keys[5], (1000,), dtype=jnp.float32).astype(jnp.bfloat16)
    ok &= check_fused(g1_bf, g2_bf)

    # (d) default settings, ragged last block within a single big tile.
    g1 = jax.random.normal(keys[2], (33000,), dtype=jnp.float32)
    g2 = -0.3 * g1 + jax.random.normal(keys[3], (33000,), dtype=jnp.float32)
    ok &= check_fused(g1, g2)

    if ok:
        print("KERNEL_OK")
    else:
        print("KERNEL_MISMATCH")
</pallas_src>

<mosaic_0001>
module attributes {stable_mosaic.version = 11 : i64} {
  func.func @_minnorm_batched_kernel(%arg0: i32, %arg1: memref<8x128xf32, #tpu.memory_space<vmem>>, %arg2: memref<8x128xf32, #tpu.memory_space<vmem>>, %arg3: memref<8x128xf32, #tpu.memory_space<vmem>>, %arg4: memref<8x128xf32, #tpu.memory_space<vmem>>, %arg5: memref<8x128xf32, #tpu.memory_space<vmem>>) attributes {dimension_semantics = [#tpu.dimension_semantics<parallel>], iteration_bounds = array<i64: 1>, scalar_prefetch = 0 : i64, scratch_operands = 0 : i64, tpu.core_type = #tpu.core_type<tc>, window_params = [{transform_indices = @transform_0, window_bounds = array<i64: 8, 128>}, {transform_indices = @transform_1, window_bounds = array<i64: 8, 128>}, {transform_indices = @transform_2, window_bounds = array<i64: 8, 128>}, {transform_indices = @transform_3, window_bounds = array<i64: 8, 128>}, {transform_indices = @transform_4, window_bounds = array<i64: 8, 128>}]} {
    %c0 = arith.constant 0 : index
    %c0_0 = arith.constant 0 : index
    %0 = vector.load %arg1[%c0, %c0_0] : memref<8x128xf32, #tpu.memory_space<vmem>>, vector<8x128xf32>
    %c0_1 = arith.constant 0 : index
    %c0_2 = arith.constant 0 : index
    %1 = vector.load %arg2[%c0_1, %c0_2] : memref<8x128xf32, #tpu.memory_space<vmem>>, vector<8x128xf32>
    %c0_3 = arith.constant 0 : index
    %c0_4 = arith.constant 0 : index
    %2 = vector.load %arg3[%c0_3, %c0_4] : memref<8x128xf32, #tpu.memory_space<vmem>>, vector<8x128xf32>
    %3 = arith.addf %0, %2 : vector<8x128xf32>
    %cst = arith.constant 2.000000e+00 : f32
    %4 = vector.broadcast %cst : f32 to vector<8x128xf32>
    %5 = arith.mulf %4, %1 : vector<8x128xf32>
    %6 = arith.subf %3, %5 : vector<8x128xf32>
    %cst_5 = arith.constant 9.99999993E-9 : f32
    %7 = vector.broadcast %cst_5 : f32 to vector<8x128xf32>
    %8 = arith.addf %6, %7 : vector<8x128xf32>
    %9 = tpu.reciprocal %8 {approx = true} : vector<8x128xf32> -> vector<8x128xf32>
    %10 = arith.mulf %8, %9 : vector<8x128xf32>
    %cst_6 = arith.constant 2.000000e+00 : f32
    %11 = vector.broadcast %cst_6 : f32 to vector<8x128xf32>
    %12 = arith.subf %11, %10 : vector<8x128xf32>
    %13 = arith.mulf %9, %12 : vector<8x128xf32>
    %14 = arith.mulf %8, %13 : vector<8x128xf32>
    %cst_7 = arith.constant 2.000000e+00 : f32
    %15 = vector.broadcast %cst_7 : f32 to vector<8x128xf32>
    %16 = arith.subf %15, %14 : vector<8x128xf32>
    %17 = arith.mulf %13, %16 : vector<8x128xf32>
    %18 = arith.subf %2, %1 : vector<8x128xf32>
    %19 = arith.mulf %18, %17 : vector<8x128xf32>
    %20 = arith.subf %1, %2 : vector<8x128xf32>
    %21 = arith.mulf %19, %20 : vector<8x128xf32>
    %22 = arith.addf %2, %21 : vector<8x128xf32>
    %23 = arith.cmpf oge, %1, %0 : vector<8x128xf32>
    %24 = arith.cmpf oge, %1, %2 : vector<8x128xf32>
    %cst_8 = arith.constant 0.000000e+00 : f32
    %25 = vector.broadcast %cst_8 : f32 to vector<8x128xf32>
    %26 = arith.select %24, %25, %19 : vector<8x128xi1>, vector<8x128xf32>
    %cst_9 = arith.constant 1.000000e+00 : f32
    %27 = vector.broadcast %cst_9 : f32 to vector<8x128xf32>
    %28 = arith.select %23, %27, %26 : vector<8x128xi1>, vector<8x128xf32>
    %c0_10 = arith.constant 0 : index
    %c0_11 = arith.constant 0 : index
    %29 = vector.load %arg4[%c0_10, %c0_11] : memref<8x128xf32, #tpu.memory_space<vmem>>, vector<8x128xf32>
    tpu.vector_store %arg4[%c0_10, %c0_11], %28 {strides = array<i32>} : memref<8x128xf32, #tpu.memory_space<vmem>>, vector<8x128xf32>,
    %30 = arith.select %24, %2, %22 : vector<8x128xi1>, vector<8x128xf32>
    %31 = arith.select %23, %0, %30 : vector<8x128xi1>, vector<8x128xf32>
    %c0_12 = arith.constant 0 : index
    %c0_13 = arith.constant 0 : index
    %32 = vector.load %arg5[%c0_12, %c0_13] : memref<8x128xf32, #tpu.memory_space<vmem>>, vector<8x128xf32>
    tpu.vector_store %arg5[%c0_12, %c0_13], %31 {strides = array<i32>} : memref<8x128xf32, #tpu.memory_space<vmem>>, vector<8x128xf32>,
    return
  }
  func.func @transform_0(%arg0: i32) -> (i32, i32) {
    %c0_i32 = arith.constant 0 : i32
    %c0_i32_0 = arith.constant 0 : i32
    return %arg0, %c0_i32 : i32, i32
  }
  func.func @transform_1(%arg0: i32) -> (i32, i32) {
    %c0_i32 = arith.constant 0 : i32
    %c0_i32_0 = arith.constant 0 : i32
    return %arg0, %c0_i32 : i32, i32
  }
  func.func @transform_2(%arg0: i32) -> (i32, i32) {
    %c0_i32 = arith.constant 0 : i32
    %c0_i32_0 = arith.constant 0 : i32
    return %arg0, %c0_i32 : i32, i32
  }
  func.func @transform_3(%arg0: i32) -> (i32, i32) {
    %c0_i32 = arith.constant 0 : i32
    %c0_i32_0 = arith.constant 0 : i32
    return %arg0, %c0_i32 : i32, i32
  }
  func.func @transform_4(%arg0: i32) -> (i32, i32) {
    %c0_i32 = arith.constant 0 : i32
    %c0_i32_0 = arith.constant 0 : i32
    return %arg0, %c0_i32 : i32, i32
  }
}

</mosaic_0001>

<bundles_post_ra>
// kernel: tpu_custom_call.1
= control target key start
LH: loop header
LB: loop body
LE: loop exit
PB: predicated region body
PF: predicated region fallthrough
CT: control target
= control target key end

     0   :  { %10 = vsyncpa [#allocation3], 0  ;;  %s219_s0 = inlined_call_operand.hbm [shape: f32[1,128], index: 0, kind: input, shape index: {}]   ;;  %s220_s1 = inlined_call_operand.vmem [shape: f32[1,128], index: 1, kind: input, shape index: {}]   ;;  %s221_s2 = inlined_call_operand.vmem [shape: f32[1,128], index: 2, kind: input, shape index: {}]   ;;  %s222_s3 = inlined_call_operand.hbm [shape: f32[1,128], index: 3, kind: output, shape index: {0}]   ;;  %s223_s4 = inlined_call_operand.hbm [shape: f32[1,128], index: 4, kind: output, shape index: {1}]  }
   0x1   :  { %11 = vsyncpa [#allocation4], 0 }
   0x2   :  { %12 = vsyncpa [#allocation7], 0 }
   0x3   :  { %17 = vsyncadd [#allocation3], 112  ;;  %s165_s15 = smov [#allocation2]  }
   0x4   :  { %s18_s16 = sshll.u32 %s165_s15, 4  ;;  %s19_s16 = int_to_ptr.vmem [resolvable:$true] %s18_s16 }
   0x5   :  { %s107_s17 = scalar_lea.vmem %s19_s16, 16  ;;  %s111_s18 = scalar_lea.vmem %s19_s16, 128 }
   0x6   :  { %p108_p0 = scmp.ne.s32.totalorder %s19_s16, %s107_s17  ;;  %p112_p1 = scmp.lt.s32.totalorder %s19_s16, %s19_s16 }
   0x7   :  { %p113_p2 = scmp.lt.s32.totalorder %s111_s18, %s107_s17 }
   0x9   :  { %p114_p3 = por %p113_p2, %p112_p1 }
   0xb   :  { %p115_p4 = pnand %p114_p3, %p108_p0 }
   0xd   :  { %118 = shalt.err (!%p115_p4)
}
   0xe   :  { %s166_s19 = smov 16   ;;  %s167_s20 = smov 1  }
   0xf   :  { %24 = dma.hbm_to_vmem [thread:$0]  %s219_s0, 16, %s19_s16, [#allocation3], %s166_s19, %s166_s19, %s167_s20  }
  0x10   :  { %159 = dma.done.wait [#allocation3], 128  }
  0x11   :  { %160 = vsyncadd [#allocation3], 4294967168  ;;  %v32_v0 = vld [vmem:[#allocation2] sm:$0xff] }
  0x12   :  { %v33_v1 = vld [vmem:[%s220_s1] sm:$0xff] }
  0x13   :  { %v34_v2 = vld [vmem:[%s221_s2] sm:$0xff]  ;;  %v36_v4 = vmul.f32 2.0, %v33_v1  ;;  %vm51_vm1 = vcmp.ge.f32.partialorder %v33_v1, %v32_v0 }
  0x14   :  { %v35_v3 = vadd.f32 %v34_v2, %v32_v0  ;;  %v46_v13 = vsub.f32 %v34_v2, %v33_v1  ;;  %v48_v15 = vsub.f32 %v33_v1, %v34_v2  ;;  %vm52_vm0 = vcmp.ge.f32.partialorder %v33_v1, %v34_v2 }
  0x16   :  { %v37_v5 = vsub.f32 %v35_v3, %v36_v4 }
  0x18   :  { %v38_v6 = vadd.f32 1e-08, %v37_v5 }
  0x1a   :  { %97 = vrcp.f32 %v38_v6 }
  0x27   :  { %v98_v7 = vpop.eup %97 }
  0x28   :  { %v40_v8 = vmul.f32 %v98_v7, %v38_v6 }
  0x2a   :  { %v41_v9 = vsub.f32 2.0, %v40_v8 }
  0x2c   :  { %v42_v10 = vmul.f32 %v98_v7, %v41_v9 }
  0x2e   :  { %v43_v11 = vmul.f32 %v42_v10, %v38_v6 }
  0x30   :  { %v44_v12 = vsub.f32 2.0, %v43_v11 }
  0x32   :  { %v45_v14 = vmul.f32 %v44_v12, %v42_v10 }
  0x34   :  { %v47_v16 = vmul.f32 %v46_v13, %v45_v14 }
  0x36   :  { %v49_v17 = vmul.f32 %v48_v15, %v47_v16  ;;  %v53_v18 = vsel %vm52_vm0, 0.0, %v47_v16 }
  0x37   :  { %v54_v19 = vsel %vm51_vm1, 1.0, %v53_v18 }
  0x38   :  { %55 = vst [vmem:[#allocation5] sm:$0xff] %v54_v19  ;;  %v50_v20 = vadd.f32 %v49_v17, %v34_v2 }
  0x3a   :  { %v56_v21 = vsel %vm52_vm0, %v34_v2, %v50_v20 }
  0x3b   :  { %v57_v22 = vsel %vm51_vm1, %v32_v0, %v56_v21 }
  0x3c   :  { %58 = vst [vmem:[#allocation6] sm:$0xff] %v57_v22 }
  0x3d   :  { %63 = vsyncadd [#allocation4], 112  ;;  %s168_s0 = smov [#allocation5]  }
  0x3e   :  { %s64_s1 = sshll.u32 %s168_s0, 4  ;;  %s65_s1 = int_to_ptr.vmem [resolvable:$true] %s64_s1 }
  0x3f   :  { %s119_s2 = scalar_lea.vmem %s65_s1, 16  ;;  %s123_s27 = scalar_lea.vmem %s65_s1, 128 }
  0x40   :  { %p120_p5 = scmp.ne.s32.totalorder %s65_s1, %s119_s2  ;;  %p124_p6 = scmp.lt.s32.totalorder %s65_s1, %s65_s1 }
  0x41   :  { %p125_p7 = scmp.lt.s32.totalorder %s123_s27, %s119_s2 }
  0x43   :  { %p126_p8 = por %p125_p7, %p124_p6 }
  0x45   :  { %p127_p9 = pnand %p126_p8, %p120_p5 }
  0x47   :  { %130 = shalt.err (!%p127_p9)
}
  0x48   :  { %70 = dma.vmem_to_hbm [thread:$0]  %s65_s1, 16, %s222_s3, [#allocation4], %s166_s19, %s166_s19, %s167_s20  }
  0x49   :  { %75 = vsyncadd [#allocation7], 112  ;;  %s169_s30 = smov [#allocation6]  }
  0x4a   :  { %s76_s5 = sshll.u32 %s169_s30, 4  ;;  %s77_s5 = int_to_ptr.vmem [resolvable:$true] %s76_s5 }
  0x4b   :  { %s139_s6 = scalar_lea.vmem %s77_s5, 16  ;;  %s143_s7 = scalar_lea.vmem %s77_s5, 128 }
  0x4c   :  { %p140_p10 = scmp.ne.s32.totalorder %s77_s5, %s139_s6  ;;  %p144_p11 = scmp.lt.s32.totalorder %s77_s5, %s77_s5 }
  0x4d   :  { %p145_p12 = scmp.lt.s32.totalorder %s143_s7, %s139_s6 }
  0x4f   :  { %p146_p13 = por %p145_p12, %p144_p11 }
  0x51   :  { %p147_p0 = pnand %p146_p13, %p140_p10 }
  0x53   :  { %150 = shalt.err (!%p147_p0)
}
  0x54   :  { %82 = dma.vmem_to_hbm [thread:$0]  %s77_s5, 16, %s223_s4, [#allocation7], %s166_s19, %s166_s19, %s167_s20  }
  0x55   :  { %161 = dma.done.wait [#allocation4], 128  }
  0x56   :  { %162 = vsyncadd [#allocation4], 4294967168 }
  0x57   :  { %163 = dma.done.wait [#allocation7], 128  }
  0x58   :  { %164 = vsyncadd [#allocation7], 4294967168 }
  0x59   :  { %89 = vsyncpa [#allocation3], 1 }
  0x5a   :  { %90 = vsyncpa [#allocation4], 1 }
  0x5b   :  { %91 = vsyncpa [#allocation7], 1 }

</bundles_post_ra>
